<compile_context>
chip_gen: v6e
topology: v6e:2x2x1
jax: 0.10.0
libtpu: 0.0.40
codegen_flags: <defaults>
</compile_context>

<pallas_src>
import functools

import jax
import jax.numpy as jnp
from jax.experimental import pallas as pl
from jax.experimental.pallas import tpu as pltpu


def _round_up(x, m):
    return ((x + m - 1) // m) * m


# --------------------------------------------------------------------------
# Fused kernel: conv3x3 (one MXU dot) + ReLU + folded BN + 2x2 max-pool + LN.
# --------------------------------------------------------------------------
def fused_conv_pool_ln_kernel(p_ref, w_ref, prm_ref, o_ref, *, cout, eps):
    # p_ref:   (4, tile_p, 9*Cin) bf16 -- im2col patches, 2x2-window-position major
    # w_ref:   (9*Cin, Cpad)      bf16 -- conv weight, lanes zero-padded
    # prm_ref: (8, Cpad)          f32  -- rows: conv_b, bn_scale, bn_shift, ln_g, ln_b, 0,0,0
    # o_ref:   (tile_p, Cpad)
    four, tile_p, kdim = p_ref.shape
    patches = p_ref[...].reshape(four * tile_p, kdim)

    # 3x3 conv as a single MXU contraction (K = 9*Cin), f32 accumulation.
    acc = jnp.dot(patches, w_ref[...], preferred_element_type=jnp.float32)

    prm = prm_ref[...]
    conv_b, bn_scale, bn_shift = prm[0:1], prm[1:2], prm[2:3]
    ln_g, ln_b = prm[3:4], prm[4:5]

    acc = acc + conv_b                       # conv bias
    acc = jnp.maximum(acc, 0.0)              # ReLU
    acc = acc * bn_scale + bn_shift          # BatchNorm2d (eval, folded running stats)

    # MaxPool2d(2, 2): the 4 window positions are contiguous tile_p row groups.
    m = jnp.maximum(
        jnp.maximum(acc[0 * tile_p:1 * tile_p], acc[1 * tile_p:2 * tile_p]),
        jnp.maximum(acc[2 * tile_p:3 * tile_p], acc[3 * tile_p:4 * tile_p]))

    # LayerNorm over the true channel count; padded lanes are exactly zero by
    # construction, so unmasked lane sums already equal sums over valid lanes.
    inv_c = 1.0 / cout
    mu = jnp.sum(m, axis=-1, keepdims=True) * inv_c
    ex2 = jnp.sum(m * m, axis=-1, keepdims=True) * inv_c
    var = jnp.maximum(ex2 - mu * mu, 0.0)
    xhat = (m - mu) * jax.lax.rsqrt(var + eps)
    o_ref[...] = (xhat * ln_g + ln_b).astype(o_ref.dtype)


def _choose_tile_p(p, n, max_tile=512):
    """Pooled-row tile: multiple of 16 (bf16), <= max_tile, >=2 programs if N==1."""
    t = min(max_tile, _round_up(p, 16))
    if n < 2:
        # Keep at least 2 grid programs so both TensorCores on a 2-TC chip
        # (v7x) have work under ("parallel", "parallel") semantics.
        while t > 16 and pl.cdiv(p, t) < 2:
            t = _round_up(t // 2, 16)
    return t


# --------------------------------------------------------------------------
# Wrapper
# --------------------------------------------------------------------------
def multires_block_3_forward(x_nchw, params, *, out_dtype=jnp.float32):
    N, Cin, H, W = x_nchw.shape
    Cout = params["conv_w"].shape[-1]
    assert H % 2 == 0 and W % 2 == 0, "MaxPool2d(2,2) path assumes even H, W"

    Hp, Wp = H // 2, W // 2
    P = Hp * Wp
    Kdim = 9 * Cin
    Cpad = _round_up(Cout, 128)
    tile_p = _choose_tile_p(P, N)
    P_pad = _round_up(P, tile_p)

    # ---- glue (plain JAX): bf16 im2col born directly in (N, 4, P, 9*Cin) ----
    # TODO(synk): the NCHW->NHWC transpose stays in XLA; keep activations NHWC
    # end-to-end at model scale to drop it entirely.
    x = jnp.transpose(x_nchw, (0, 2, 3, 1)).astype(jnp.bfloat16)   # NHWC, bf16
    xp = jnp.pad(x, ((0, 0), (1, 1), (1, 1), (0, 0)))              # conv pad=1

    win = []
    for a in range(2):          # 2x2 pooling-window row offset
        for b in range(2):      # 2x2 pooling-window col offset
            taps = [xp[:, kh + a:kh + a + H:2, kw + b:kw + b + W:2, :]
                    for kh in range(3) for kw in range(3)]
            win.append(jnp.concatenate(taps, axis=-1).reshape(N, 1, P, Kdim))
    patches = jnp.concatenate(win, axis=1)                          # (N, 4, P, Kdim)
    if P_pad > P:
        patches = jnp.pad(patches, ((0, 0), (0, 0), (0, P_pad - P), (0, 0)))

    # conv weight stored HWIO (3,3,Cin,Cout); a PyTorch OIHW checkpoint must be
    # permuted (2,3,1,0) first.  Flatten to (9*Cin, Cout), zero-pad the lanes.
    w = params["conv_w"].reshape(Kdim, Cout)
    w = jnp.pad(w, ((0, 0), (0, Cpad - Cout))).astype(jnp.bfloat16)

    eps_bn = 1e-5
    bn_scale = params["bn_gamma"] / jnp.sqrt(params["bn_var"] + eps_bn)
    bn_shift = params["bn_beta"] - params["bn_mean"] * bn_scale

    def pad_row(v):
        return jnp.pad(v.astype(jnp.float32), (0, Cpad - Cout))

    zero_row = jnp.zeros((Cpad,), jnp.float32)
    prm = jnp.stack([pad_row(params["conv_b"]), pad_row(bn_scale),
                     pad_row(bn_shift), pad_row(params["ln_gamma"]),
                     pad_row(params["ln_beta"]),
                     zero_row, zero_row, zero_row], axis=0)          # (8, Cpad)

    out_itemsize = jnp.dtype(out_dtype).itemsize
    flops = 2 * N * 4 * P_pad * Kdim * Cpad
    bytes_accessed = (N * 4 * P_pad * Kdim * 2 + Kdim * Cpad * 2
                      + 8 * Cpad * 4 + N * P_pad * Cpad * out_itemsize)

    # VMEM budget (lanes pad to 128 in VMEM): double-buffered blocks + f32 acc.
    kdim_lanes = _round_up(Kdim, 128)
    vmem_bytes = (2 * 4 * tile_p * kdim_lanes * 2       # patches block x2
                  + 2 * kdim_lanes * Cpad * 2           # weight x2
                  + 2 * 8 * Cpad * 4                    # packed params x2
                  + 2 * tile_p * Cpad * out_itemsize    # output block x2
                  + 8 * tile_p * Cpad * 4)              # f32 acc + epilogue slack
    vmem_limit = int(min(max(2 * vmem_bytes, 16 << 20), 64 << 20))

    kernel = functools.partial(fused_conv_pool_ln_kernel, cout=Cout, eps=1e-5)
    out = pl.pallas_call(
        kernel,
        out_shape=jax.ShapeDtypeStruct((N, P_pad, Cpad), out_dtype),
        grid=(N, P_pad // tile_p),
        in_specs=[
            pl.BlockSpec((None, 4, tile_p, Kdim), lambda n, j: (n, 0, j, 0)),
            pl.BlockSpec((Kdim, Cpad), lambda n, j: (0, 0)),
            pl.BlockSpec((8, Cpad), lambda n, j: (0, 0)),
        ],
        out_specs=pl.BlockSpec((None, tile_p, Cpad), lambda n, j: (n, j, 0)),
        compiler_params=pltpu.CompilerParams(
            dimension_semantics=("parallel", "parallel"),
            vmem_limit_bytes=vmem_limit),
        cost_estimate=pl.CostEstimate(flops=flops, transcendentals=0,
                                      bytes_accessed=bytes_accessed),
    )(patches, w, prm)

    # TODO(synk): at model scale, fuse this slice into the consumer's BlockSpec
    # (padded lanes/rows are exactly zero) instead of a separate XLA pass.
    return out[:, :P, :Cout]                                         # (N, P, Cout)


def init_params(key, in_ch, width):
    ks = jax.random.split(key, 8)
    return {
        # conv3x3 of conv_block(in_ch, W): weight stored HWIO (3,3,Cin,Cout)
        "conv_w": jax.random.normal(ks[0], (3, 3, in_ch, width), jnp.float32) * 0.1,
        "conv_b": jax.random.normal(ks[1], (width,), jnp.float32) * 0.1,
        # BatchNorm2d(W) -- inference-mode parameters / running stats
        "bn_gamma": jax.random.uniform(ks[2], (width,), jnp.float32, 0.5, 1.5),
        "bn_beta": jax.random.normal(ks[3], (width,), jnp.float32) * 0.1,
        "bn_mean": jax.random.normal(ks[4], (width,), jnp.float32) * 0.1,
        "bn_var": jax.random.uniform(ks[5], (width,), jnp.float32, 0.5, 1.5),
        # LayerNorm(W)
        "ln_gamma": jax.random.uniform(ks[6], (width,), jnp.float32, 0.5, 1.5),
        "ln_beta": jax.random.normal(ks[7], (width,), jnp.float32) * 0.1,
    }


if __name__ == "__main__":
    key = jax.random.PRNGKey(0)
    k_x, k_p = jax.random.split(key)

    N, in_ch, H, W = 2, 4, 16, 16          # MultiResBlock_3(in_ch=4, U=32)
    U = 32
    x = jax.random.normal(k_x, (N, in_ch, H, W), jnp.float32)   # NCHW like PyTorch
    params = init_params(k_p, in_ch, U)

    out = multires_block_3_forward(x, params)
    out = jax.block_until_ready(out)
    assert out.shape == (N, (H // 2) * (W // 2), U)
    assert bool(jnp.all(jnp.isfinite(out)))
    print("KERNEL_OK")
</pallas_src>

<mosaic_0001>
module attributes {stable_mosaic.version = 11 : i64} {
  func.func @fused_conv_pool_ln_kernel(%arg0: i32, %arg1: i32, %arg2: memref<1x4x64x36xbf16, #tpu.memory_space<vmem>>, %arg3: memref<36x128xbf16, #tpu.memory_space<vmem>>, %arg4: memref<8x128xf32, #tpu.memory_space<vmem>>, %arg5: memref<1x64x128xf32, #tpu.memory_space<vmem>>) attributes {dimension_semantics = [#tpu.dimension_semantics<parallel>, #tpu.dimension_semantics<parallel>], iteration_bounds = array<i64: 2, 1>, scalar_prefetch = 0 : i64, scratch_operands = 0 : i64, tpu.core_type = #tpu.core_type<tc>, window_params = [{transform_indices = @transform_0, window_bounds = array<i64: 1, 4, 64, 36>}, {pipeline_mode = #tpu.pipeline_mode<synchronous>, transform_indices = @transform_1, window_bounds = array<i64: 36, 128>}, {pipeline_mode = #tpu.pipeline_mode<synchronous>, transform_indices = @transform_2, window_bounds = array<i64: 8, 128>}, {transform_indices = @transform_3, window_bounds = array<i64: 1, 64, 128>}]} {
    %c0 = arith.constant 0 : index
    %c0_0 = arith.constant 0 : index
    %c0_1 = arith.constant 0 : index
    %c0_2 = arith.constant 0 : index
    %0 = vector.load %arg2[%c0, %c0_0, %c0_1, %c0_2] : memref<1x4x64x36xbf16, #tpu.memory_space<vmem>>, vector<1x4x64x36xbf16>
    %1 = vector.shape_cast %0 : vector<1x4x64x36xbf16> to vector<4x64x36xbf16>
    %2 = vector.shape_cast %1 : vector<4x64x36xbf16> to vector<256x36xbf16>
    %c0_3 = arith.constant 0 : index
    %c0_4 = arith.constant 0 : index
    %3 = vector.load %arg3[%c0_3, %c0_4] : memref<36x128xbf16, #tpu.memory_space<vmem>>, vector<36x128xbf16>
    %cst = arith.constant dense<0.000000e+00> : vector<256x128xf32>
    %4 = tpu.matmul %2, %3, %cst {dimension_numbers = #tpu.dot_dimension_numbers<[1], [0], [0], [1], [0, 0, 1, 1], [], []>} : vector<256x36xbf16>, vector<36x128xbf16>, vector<256x128xf32> -> vector<256x128xf32>
    %c0_5 = arith.constant 0 : index
    %c0_6 = arith.constant 0 : index
    %5 = vector.load %arg4[%c0_5, %c0_6] : memref<8x128xf32, #tpu.memory_space<vmem>>, vector<8x128xf32>
    %6 = vector.extract_strided_slice %5 {offsets = [0, 0], sizes = [1, 128], strides = [1, 1]} : vector<8x128xf32> to vector<1x128xf32>
    %7 = vector.extract_strided_slice %5 {offsets = [1, 0], sizes = [1, 128], strides = [1, 1]} : vector<8x128xf32> to vector<1x128xf32>
    %8 = vector.extract_strided_slice %5 {offsets = [2, 0], sizes = [1, 128], strides = [1, 1]} : vector<8x128xf32> to vector<1x128xf32>
    %9 = vector.extract_strided_slice %5 {offsets = [3, 0], sizes = [1, 128], strides = [1, 1]} : vector<8x128xf32> to vector<1x128xf32>
    %10 = vector.extract_strided_slice %5 {offsets = [4, 0], sizes = [1, 128], strides = [1, 1]} : vector<8x128xf32> to vector<1x128xf32>
    %11 = vector.broadcast %6 : vector<1x128xf32> to vector<256x128xf32>
    %12 = arith.addf %4, %11 : vector<256x128xf32>
    %cst_7 = arith.constant 0.000000e+00 : f32
    %13 = vector.broadcast %cst_7 : f32 to vector<256x128xf32>
    %14 = arith.maximumf %12, %13 : vector<256x128xf32>
    %15 = vector.broadcast %7 : vector<1x128xf32> to vector<256x128xf32>
    %16 = arith.mulf %14, %15 : vector<256x128xf32>
    %17 = vector.broadcast %8 : vector<1x128xf32> to vector<256x128xf32>
    %18 = arith.addf %16, %17 : vector<256x128xf32>
    %19 = vector.extract_strided_slice %18 {offsets = [0, 0], sizes = [64, 128], strides = [1, 1]} : vector<256x128xf32> to vector<64x128xf32>
    %20 = vector.extract_strided_slice %18 {offsets = [64, 0], sizes = [64, 128], strides = [1, 1]} : vector<256x128xf32> to vector<64x128xf32>
    %21 = arith.maximumf %19, %20 : vector<64x128xf32>
    %22 = vector.extract_strided_slice %18 {offsets = [128, 0], sizes = [64, 128], strides = [1, 1]} : vector<256x128xf32> to vector<64x128xf32>
    %23 = vector.extract_strided_slice %18 {offsets = [192, 0], sizes = [64, 128], strides = [1, 1]} : vector<256x128xf32> to vector<64x128xf32>
    %24 = arith.maximumf %22, %23 : vector<64x128xf32>
    %25 = arith.maximumf %21, %24 : vector<64x128xf32>
    %cst_8 = arith.constant dense<0.000000e+00> : vector<64xf32>
    %26 = vector.multi_reduction <add>, %25, %cst_8 [1] : vector<64x128xf32> to vector<64xf32>
    %27 = vector.shape_cast %26 : vector<64xf32> to vector<64x1xf32>
    %cst_9 = arith.constant 3.125000e-02 : f32
    %28 = vector.broadcast %cst_9 : f32 to vector<64x1xf32>
    %29 = arith.mulf %27, %28 : vector<64x1xf32>
    %30 = arith.mulf %25, %25 : vector<64x128xf32>
    %cst_10 = arith.constant dense<0.000000e+00> : vector<64xf32>
    %31 = vector.multi_reduction <add>, %30, %cst_10 [1] : vector<64x128xf32> to vector<64xf32>
    %32 = vector.shape_cast %31 : vector<64xf32> to vector<64x1xf32>
    %cst_11 = arith.constant 3.125000e-02 : f32
    %33 = vector.broadcast %cst_11 : f32 to vector<64x1xf32>
    %34 = arith.mulf %32, %33 : vector<64x1xf32>
    %35 = arith.mulf %29, %29 : vector<64x1xf32>
    %36 = arith.subf %34, %35 : vector<64x1xf32>
    %cst_12 = arith.constant 0.000000e+00 : f32
    %37 = vector.broadcast %cst_12 : f32 to vector<64x1xf32>
    %38 = arith.maximumf %36, %37 : vector<64x1xf32>
    %39 = vector.broadcast %29 : vector<64x1xf32> to vector<64x128xf32>
    %40 = arith.subf %25, %39 : vector<64x128xf32>
    %cst_13 = arith.constant 9.99999974E-6 : f32
    %41 = vector.broadcast %cst_13 : f32 to vector<64x1xf32>
    %42 = arith.addf %38, %41 : vector<64x1xf32>
    %43 = math.rsqrt %42 : vector<64x1xf32>
    %44 = vector.broadcast %43 : vector<64x1xf32> to vector<64x128xf32>
    %45 = arith.mulf %40, %44 : vector<64x128xf32>
    %46 = vector.broadcast %9 : vector<1x128xf32> to vector<64x128xf32>
    %47 = arith.mulf %45, %46 : vector<64x128xf32>
    %48 = vector.broadcast %10 : vector<1x128xf32> to vector<64x128xf32>
    %49 = arith.addf %47, %48 : vector<64x128xf32>
    %c0_14 = arith.constant 0 : index
    %c0_15 = arith.constant 0 : index
    %c0_16 = arith.constant 0 : index
    %50 = vector.load %arg5[%c0_14, %c0_15, %c0_16] : memref<1x64x128xf32, #tpu.memory_space<vmem>>, vector<1x64x128xf32>
    %51 = vector.shape_cast %50 : vector<1x64x128xf32> to vector<64x128xf32>
    %52 = vector.shape_cast %49 : vector<64x128xf32> to vector<1x64x128xf32>
    tpu.vector_store %arg5[%c0_14, %c0_15, %c0_16], %52 {strides = array<i32>} : memref<1x64x128xf32, #tpu.memory_space<vmem>>, vector<1x64x128xf32>,
    return
  }
  func.func @transform_0(%arg0: i32, %arg1: i32) -> (i32, i32, i32, i32) {
    %c0_i32 = arith.constant 0 : i32
    %c0_i32_0 = arith.constant 0 : i32
    %c0_i32_1 = arith.constant 0 : i32
    return %arg0, %c0_i32, %arg1, %c0_i32_0 : i32, i32, i32, i32
  }
  func.func @transform_1(%arg0: i32, %arg1: i32) -> (i32, i32) {
    %c0_i32 = arith.constant 0 : i32
    %c0_i32_0 = arith.constant 0 : i32
    %c0_i32_1 = arith.constant 0 : i32
    return %c0_i32, %c0_i32_0 : i32, i32
  }
  func.func @transform_2(%arg0: i32, %arg1: i32) -> (i32, i32) {
    %c0_i32 = arith.constant 0 : i32
    %c0_i32_0 = arith.constant 0 : i32
    %c0_i32_1 = arith.constant 0 : i32
    return %c0_i32, %c0_i32_0 : i32, i32
  }
  func.func @transform_3(%arg0: i32, %arg1: i32) -> (i32, i32, i32) {
    %c0_i32 = arith.constant 0 : i32
    %c0_i32_0 = arith.constant 0 : i32
    return %arg0, %arg1, %c0_i32 : i32, i32, i32
  }
}

</mosaic_0001>

<bundles_post_ra>
// kernel: tpu_custom_call.1
= control target key start
LH: loop header
LB: loop body
LE: loop exit
PB: predicated region body
PF: predicated region fallthrough
CT: control target
= control target key end

     0   :  { %8 = vsyncpa [#allocation3], 0  ;;  %s1667_s0 = inlined_call_operand.vmem [shape: bf16[2,4,64,36], index: 0, kind: input, shape index: {}]   ;;  %s1668_s1 = inlined_call_operand.vmem [shape: bf16[36,128], index: 1, kind: input, shape index: {}]   ;;  %s1669_s2 = inlined_call_operand.vmem [shape: f32[8,128], index: 2, kind: input, shape index: {}]   ;;  %s1670_s3 = inlined_call_operand.hbm [shape: f32[2,64,128], index: 3, kind: output, shape index: {}]  }
   0x1   :  { %10 = vsyncpa [#allocation3 + $0x1], 0  ;;  %s1227_s12 = smov 0   ;;  %s1229_s13 = smov 0  }
   0x2   :  { %s1231_s14 = smov 0   ;;  %s1233_s15 = smov 0  }
   0x3   :  { %s1235_s16 = smov 0   ;;  %s1237_s17 = smov 0  }
   0x4 LB: > { %s919_s18 = sadd.s32 4294967295, %s1202_s17   ;;  %s920_s19 = sadd.s32 4294967294, %s1202_s17   ;;  %s1202_s17 = sphi %s1237_s17, %s16_s17   ;;  %s1198_s16 = sphi %s1235_s16, %s1677_s16   ;;  %s1194_s15 = sphi %s1233_s15, %s1676_s15   ;;  %s1190_s14 = sphi %s1231_s14, %s1675_s14   ;;  %s1186_s13 = sphi %s1229_s13, %s1674_s13   ;;  %s1182_s12 = sphi %s1227_s12, %s1673_s12  }
   0x5   : > { %s28_s20 = sadd.s32 1, %s1198_s16  ;;  %s107_s21 = sadd.s32 1, %s1190_s14 }
   0x6   : > { %p30_p0 = scmp.ge.s32.totalorder %s28_s20, 2  ;;  %p117_p1 = scmp.ne.s32.totalorder %s1190_s14, %s1186_s13 }
   0x7   : > { %p118_p2 = scmp.eq.s32.totalorder %s919_s18, 1  ;;  %p123_p3 = scmp.ne.s32.totalorder %s1186_s13, %s1182_s12 }
   0x8   : > { %s1679_s20 = smov (%p30_p0, %s28_s20), 0  ;;  %p124_p5 = scmp.eq.s32.totalorder %s920_s19, 1 }
   0x9   : > { %p1267_p4 = por %p118_p2, %p117_p1  ;;  %s102_s23 = ssub.s32 %s1198_s16, %s1679_s20 }
   0xa   : > { %p923_p6 = scmp.ge.s32.totalorder %s1202_s17, 1  ;;  %p105_p7 = scmp.eq.s32.totalorder %s102_s23, 0 }
   0xb   : > { %p1274_p8 = por %p124_p5, %p123_p3  ;;  %p161_p9 = scmp.lt.s32.totalorder %s1202_s17, 3 }
   0xc   : > { %s1280_s25 = scalar_select %p105_p7, %s1190_s14, %s107_s21  }
   0xd   : > { %p162_p10 = pnand %p923_p6, %p161_p9 }
   0xe   : > { %p190_p11 = scmp.lt.s32.totalorder (!%p162_p10), %s1194_s15, 1  ;;  %s186_s18 = sand.u32 (!%p162_p10), 1, %s1186_s13  }
   0xf   : > { %165 = sbr.rel (%p162_p10) target bundleno = 469 (0x1d5), region = 32  ;;  %s924_s19 = sshll.u32 (!%p162_p10), %s186_s18, 6 }
  0x10   : > { %s1578_s21 = scalar_lea.vmem (!%p162_p10), [#allocation2], %s924_s19  ;;  %s968_s23 = sshll.u32 (!%p162_p10), %s1194_s15, 10 }
  0x11   : > { %s840_s26 = sshll.u32 (!%p162_p10), %s1578_s21, 4  ;;  %s1613_s29 = scalar_lea.hbm (!%p162_p10), %s1670_s3, %s968_s23  ;;  %s1615_s26 = int_to_ptr.vmem [resolvable:$true] %s840_s26 }
  0x12   : > { %s1204_s4 = smov (!%p162_p10), [#allocation2]  }
  0x13   : > { %s1130_s5 = sshll.u32 (!%p162_p10), %s1204_s4, 4  ;;  %s1131_s5 = int_to_ptr.vmem [resolvable:$false] %s1130_s5 }
  0x14   : > { %v1091_v0 = vld [vmem:[%s1668_s1 + $0x10] ss:$0 sps:$4 sm:$0x33]   ;;  %vm387_vm0 = vcmask 1041408   ;;  %v1092_v1 = vld [vmem:[%s1668_s1 + $0x8] sm:$0xff]   ;;  %s191_s30 = scalar_select %p190_p11, %s1194_s15, 1  ;;  %v239_v20 = vlaneseq }
  0x15   : > { %1032 = vmatprep.subr.msk.bf16.mxu0 %vm387_vm0, %v1091_v0  ;;  %1033 = vmatprep.subr.msk.bf16.mxu1 %vm387_vm0, %v1091_v0  ;;  %v389_v2 = vsel %vm387_vm0, %v1091_v0, 0  ;;  %v1093_v3 = vld [vmem:[%s1668_s1] sm:$0xff]   ;;  %vm338_vm1 = vcmask 293888   ;;  %s1622_s15 = scalar_lea.sflag [#allocation3], %s186_s18  ;;  %p1133_p1 = scmp.lt.s32.totalorder %s1615_s26, %s1131_s5 }
  0x16   : > { %989 = vmatpush3.bf16.msra.mxu0 %v389_v2  ;;  %1029 = vmatpush3.bf16.msra.mxu1 %v389_v2  ;;  %s967_s6 = sshll.u32 %s191_s30, 7  ;;  %v1330_v21 = vshrl.u32 %v239_v20, 7  ;;  %v1336_v23 = vld [vmem:[%s1669_s2] sm:$0xff]  ;;  %s1126_s30 = scalar_lea.vmem %s1615_s26, 1024 }
  0x17   : > { %990 = vmatprep.subr.bf16.mxu0 %v1092_v1  ;;  %1027 = vmatprep.subr.bf16.mxu1 %v1092_v1  ;;  %s1296_s9 = scalar_lea.vmem %s1667_s0, %s967_s6  ;;  %p1127_p12 = scmp.ne.s32.totalorder %s1615_s26, %s1126_s30 }
  0x18   : > { %v1094_v4 = vld [vmem:[%s1296_s9] sm:$0xff]   ;;  %v1096_v6 = vld [vmem:[%s1296_s9 + $0x8] sm:$0xff]   ;;  %v1098_v8 = vld [vmem:[%s1296_s9 + $0x10] sm:$0xff]   ;;  %v241_v22 = vsub.s32 0, %v1330_v21  ;;  %v586_v32 = vsub.s32 1, %v1330_v21  ;;  %v622_v42 = vsub.s32 2, %v1330_v21 }
  0x19   : > { %v1095_v5 = vld [vmem:[%s1296_s9 + $0x40] sm:$0xff]   ;;  %994 = vmatprep.mubr.msk.bf16.mxu0 %vm338_vm1, %v1094_v4  ;;  %v1097_v7 = vld [vmem:[%s1296_s9 + $0x48] sm:$0xff]   ;;  %v1099_v9 = vld [vmem:[%s1296_s9 + $0x50] sm:$0xff]   ;;  %p1128_p13 = pnand %p1127_p12, %p1267_p4  ;;  %s1132_s6 = scalar_lea.vmem %s1131_s5, 2048 }
  0x1a   : > { %991 = vmatpush3.bf16.msra.mxu0 %v1092_v1  ;;  %1030 = vmatpush3.bf16.msra.mxu1 %v1092_v1  ;;  %v1100_v10 = vld [vmem:[%s1296_s9 + $0x18] sm:$0xff]   ;;  %v1102_v12 = vld [vmem:[%s1296_s9 + $0x20] sm:$0xff]   ;;  %v1104_v14 = vld [vmem:[%s1296_s9 + $0x28] sm:$0xff]   ;;  %v1339_v26 = vrot.slane %v1336_v23, %v241_v22  ;;  %v1347_v41 = vrot.slane %v1336_v23, %v586_v32  ;;  %v1358_v53 = vrot.slane %v1336_v23, %v622_v42  ;;  %p1134_p2 = scmp.lt.s32.totalorder %s1132_s6, %s1126_s30 }
  0x1b   : > { %992 = vmatprep.subr.bf16.mxu0 %v1093_v3  ;;  %1028 = vmatprep.subr.bf16.mxu1 %v1093_v3  ;;  %v1101_v11 = vld [vmem:[%s1296_s9 + $0x58] sm:$0xff]   ;;  %v1103_v13 = vld [vmem:[%s1296_s9 + $0x60] sm:$0xff]   ;;  %v1105_v15 = vld [vmem:[%s1296_s9 + $0x68] sm:$0xff]   ;;  %p1129_p0 = pneg %p1128_p13 }
  0x1c   : > { %1010 = vmatprep.mubr.msk.bf16.mxu1 %vm338_vm1, %v1095_v5  ;;  %v1106_v16 = vld [vmem:[%s1296_s9 + $0x30] sm:$0xff]   ;;  %v1108_v18 = vld [vmem:[%s1296_s9 + $0x38] sm:$0xff]   ;;  %p1135_p3 = por %p1134_p2, %p1133_p1 }
  0x1d   : > { %v1107_v17 = vld [vmem:[%s1296_s9 + $0x70] sm:$0xff]   ;;  %v1109_v19 = vld [vmem:[%s1296_s9 + $0x78] sm:$0xff]  }
  0x1e   : > { %993 = vmatpush3.bf16.msra.mxu0 %v1093_v3  ;;  %1031 = vmatpush3.bf16.msra.mxu1 %v1093_v3  ;;  %p1136_p5 = pnand %p1135_p3, %p1129_p0 }
  0x21   : > { %995 = vmatmul.mubr.msk.bf16.vlgmr.msra.gmra.mxu0 %vm338_vm1, %v1096_v6  ;;  %1011 = vmatmul.mubr.msk.bf16.vlgmr.msra.gmra.mxu1 %vm338_vm1, %v1097_v7 }
  0x22   : > { %998 = vmatprep.mubr.msk.bf16.mxu0 %vm338_vm1, %v1098_v8  ;;  %1014 = vmatprep.mubr.msk.bf16.mxu1 %vm338_vm1, %v1099_v9 }
  0x29   : > { %999 = vmatmul.mubr.msk.bf16.gmra.mxu0 %vm338_vm1, %v1100_v10  ;;  %1015 = vmatmul.mubr.msk.bf16.gmra.mxu1 %vm338_vm1, %v1101_v11 }
  0x2a   : > { %1002 = vmatprep.mubr.msk.bf16.mxu0 %vm338_vm1, %v1102_v12  ;;  %1018 = vmatprep.mubr.msk.bf16.mxu1 %vm338_vm1, %v1103_v13 }
  0x31   : > { %1003 = vmatmul.mubr.msk.bf16.gmra.mxu0 %vm338_vm1, %v1104_v14  ;;  %1019 = vmatmul.mubr.msk.bf16.gmra.mxu1 %vm338_vm1, %v1105_v15 }
  0x32   : > { %1006 = vmatprep.mubr.msk.bf16.mxu0 %vm338_vm1, %v1106_v16  ;;  %1022 = vmatprep.mubr.msk.bf16.mxu1 %vm338_vm1, %v1107_v17 }
  0x39   : > { %1007 = vmatmul.mubr.msk.bf16.gmra.mxu0 %vm338_vm1, %v1108_v18  ;;  %1023 = vmatmul.mubr.msk.bf16.gmra.mxu1 %vm338_vm1, %v1109_v19 }
  0xe1   : > { %v996_v24 = vpop.f32.mrf.mxu0  ;;  %v1012_v25 = vpop.f32.mrf.mxu1 }
  0xe2   : > { %v434_v31 = vadd.f32 %v996_v24, %v1339_v26  ;;  %v498_v33 = vadd.f32 %v1012_v25, %v1339_v26 }
  0xe3   : > { %v425_v27 = vpop.f32.mrf.mxu0  ;;  %v489_v28 = vpop.f32.mrf.mxu1 }
  0xe4   : > { %v426_v36 = vadd.f32 %v425_v27, %v1339_v26  ;;  %v490_v37 = vadd.f32 %v489_v28, %v1339_v26  ;;  %v554_v40 = vmax.f32 %v434_v31, 0.0  ;;  %v570_v43 = vmax.f32 %v498_v33, 0.0 }
  0xe5   : > { %v997_v29 = vpop.f32.mrf.mxu0  ;;  %v1013_v30 = vpop.f32.mrf.mxu1 }
  0xe6   : > { %v437_v46 = vadd.f32 %v997_v29, %v1339_v26  ;;  %v501_v47 = vadd.f32 %v1013_v30, %v1339_v26  ;;  %v552_v48 = vmax.f32 %v426_v36, 0.0  ;;  %v568_v49 = vmax.f32 %v490_v37, 0.0 }
  0xe7   : > { %v428_v34 = vpop.f32.mrf.mxu0  ;;  %v492_v35 = vpop.f32.mrf.mxu1  ;;  %v590_v52 = vmul.f32 %v1347_v41, %v554_v40  ;;  %v606_v54 = vmul.f32 %v1347_v41, %v570_v43 }
  0xe8   : > { %v555_v57 = vmax.f32 %v437_v46, 0.0  ;;  %v571_v58 = vmax.f32 %v501_v47, 0.0  ;;  %v588_v59 = vmul.f32 %v1347_v41, %v552_v48  ;;  %v604_v60 = vmul.f32 %v1347_v41, %v568_v49 }
  0xe9   : > { %v1000_v38 = vpop.f32.mrf.mxu0  ;;  %v1016_v39 = vpop.f32.mrf.mxu1  ;;  %v429_v61 = vadd.f32 %v428_v34, %v1339_v26  ;;  %v493_v62 = vadd.f32 %v492_v35, %v1339_v26  ;;  %v1374_v5 = vadd.f32 %v1358_v53, %v590_v52  ;;  %v1377_v6 = vadd.f32 %v1358_v53, %v606_v54 }
  0xea   : > { %v450_v1 = vadd.f32 %v1000_v38, %v1339_v26  ;;  %v514_v2 = vadd.f32 %v1016_v39, %v1339_v26  ;;  %v591_v9 = vmul.f32 %v1347_v41, %v555_v57  ;;  %v607_v10 = vmul.f32 %v1347_v41, %v571_v58 }
  0xeb   : > { %v441_v44 = vpop.f32.mrf.mxu0  ;;  %v505_v45 = vpop.f32.mrf.mxu1  ;;  %v1384_v13 = vadd.f32 %v1358_v53, %v588_v59  ;;  %v1387_v14 = vadd.f32 %v1358_v53, %v604_v60  ;;  %v553_v15 = vmax.f32 %v429_v61, 0.0  ;;  %v569_v16 = vmax.f32 %v493_v62, 0.0 }
  0xec   : > { %v558_v19 = vmax.f32 %v450_v1, 0.0  ;;  %v574_v20 = vmax.f32 %v514_v2, 0.0  ;;  %v1390_v25 = vadd.f32 %v441_v44, %v1339_v26  ;;  %v1393_v27 = vadd.f32 %v505_v45, %v1339_v26 }
  0xed   : > { %v1352_v50 = vpop.f32.mrf.mxu0  ;;  %v1354_v51 = vpop.f32.mrf.mxu1  ;;  %v1398_v32 = vadd.f32 %v1358_v53, %v591_v9  ;;  %v1401_v33 = vadd.f32 %v1358_v53, %v607_v10  ;;  %v589_v43 = vmul.f32 %v1347_v41, %v553_v15  ;;  %v605_v44 = vmul.f32 %v1347_v41, %v569_v16 }
  0xee   : > { %v1410_v47 = vmul.f32 %v1347_v41, %v558_v19  ;;  %v1413_v48 = vmul.f32 %v1347_v41, %v574_v20  ;;  %v453_v58 = vadd.f32 %v1352_v50, %v1339_v26  ;;  %v556_v62 = vmax.f32 %v1390_v25, 0.0 }
  0xef   : > { %v1361_v55 = vpop.f32.mrf.mxu0  ;;  %v1363_v56 = vpop.f32.mrf.mxu1  ;;  %v625_v9 = vadd.f32 %v1358_v53, %v589_v43  ;;  %v641_v10 = vadd.f32 %v1358_v53, %v605_v44 }
  0xf0   : > { %v445_v44 = vadd.f32 %v1361_v55, %v1339_v26 }
  0xf1   : > { %v1004_v63 = vpop.f32.mrf.mxu0  ;;  %v1020_v0 = vpop.f32.mrf.mxu1 }
  0xf2   : > { %v466_v3 = vadd.f32 %v1004_v63, %v1339_v26  ;;  %v530_v4 = vadd.f32 %v1020_v0, %v1339_v26  ;;  %v572_v63 = vmax.f32 %v1393_v27, 0.0  ;;  %v517_v0 = vadd.f32 %v1354_v51, %v1339_v26 }
  0xf3   : > { %v457_v7 = vpop.f32.mrf.mxu0  ;;  %v521_v8 = vpop.f32.mrf.mxu1 }
  0xf4   : > { %v458_v11 = vadd.f32 %v457_v7, %v1339_v26  ;;  %v522_v12 = vadd.f32 %v521_v8, %v1339_v26  ;;  %v562_v22 = vmax.f32 %v466_v3, 0.0  ;;  %v578_v24 = vmax.f32 %v530_v4, 0.0 }
  0xf5   : > { %v1005_v17 = vpop.f32.mrf.mxu0  ;;  %v1021_v18 = vpop.f32.mrf.mxu1  ;;  %v575_v20 = vmax.f32 %v517_v0, 0.0 }
  0xf6   : > { %v469_v28 = vadd.f32 %v1005_v17, %v1339_v26  ;;  %v533_v29 = vadd.f32 %v1021_v18, %v1339_v26  ;;  %v560_v34 = vmax.f32 %v458_v11, 0.0  ;;  %v576_v35 = vmax.f32 %v522_v12, 0.0 }
  0xf7   : > { %v460_v30 = vpop.f32.mrf.mxu0  ;;  %v524_v31 = vpop.f32.mrf.mxu1  ;;  %v598_v45 = vmul.f32 %v1347_v41, %v562_v22  ;;  %v614_v46 = vmul.f32 %v1347_v41, %v578_v24  ;;  %v559_v12 = vmax.f32 %v453_v58, 0.0 }
  0xf8   : > { %v563_v36 = vmax.f32 %v469_v28, 0.0  ;;  %v579_v37 = vmax.f32 %v533_v29, 0.0  ;;  %v461_v38 = vadd.f32 %v460_v30, %v1339_v26  ;;  %v525_v39 = vadd.f32 %v524_v31, %v1339_v26 }
  0xf9   : > { %v1008_v40 = vpop.f32.mrf.mxu0  ;;  %v1024_v42 = vpop.f32.mrf.mxu1  ;;  %v596_v59 = vmul.f32 %v1347_v41, %v560_v34  ;;  %v612_v60 = vmul.f32 %v1347_v41, %v576_v35  ;;  %v634_v4 = vadd.f32 %v1358_v53, %v598_v45  ;;  %v650_v50 = vadd.f32 %v1358_v53, %v614_v46 }
  0xfa   : > { %v561_v49 = vmax.f32 %v461_v38, 0.0  ;;  %v577_v52 = vmax.f32 %v525_v39, 0.0  ;;  %v599_v61 = vmul.f32 %v1347_v41, %v563_v36  ;;  %v615_v1 = vmul.f32 %v1347_v41, %v579_v37 }
  0xfb   : > { %v473_v54 = vpop.f32.mrf.mxu0  ;;  %v537_v57 = vpop.f32.mrf.mxu1  ;;  %v632_v15 = vadd.f32 %v1358_v53, %v596_v59  ;;  %v648_v16 = vadd.f32 %v1358_v53, %v612_v60  ;;  %v482_v24 = vadd.f32 %v1008_v40, %v1339_v26  ;;  %v546_v28 = vadd.f32 %v1024_v42, %v1339_v26 }
  0xfc   : > { %v597_v7 = vmul.f32 %v1347_v41, %v561_v49  ;;  %v613_v8 = vmul.f32 %v1347_v41, %v577_v52  ;;  %v635_v17 = vadd.f32 %v1358_v53, %v599_v61  ;;  %v651_v22 = vadd.f32 %v1358_v53, %v615_v1 }
  0xfd   : > { %v1009_v2 = vpop.f32.mrf.mxu0  ;;  %v1025_v3 = vpop.f32.mrf.mxu1  ;;  %v658_v31 = vmax.f32 %v1374_v5, %v634_v4  ;;  %v666_v34 = vmax.f32 %v1377_v6, %v650_v50  ;;  %v656_v40 = vmax.f32 %v1384_v13, %v632_v15  ;;  %v664_v42 = vmax.f32 %v1387_v14, %v648_v16 }
  0xfe   : > { %v485_v11 = vadd.f32 %v1009_v2, %v1339_v26  ;;  %v549_v51 = vadd.f32 %v1025_v3, %v1339_v26  ;;  %v633_v29 = vadd.f32 %v1358_v53, %v597_v7  ;;  %v649_v30 = vadd.f32 %v1358_v53, %v613_v8 }
  0xff   : > { %v476_v18 = vpop.f32.mrf.mxu0  ;;  %v540_v19 = vpop.f32.mrf.mxu1  ;;  %v1445_v39 = vmax.f32 %v658_v31, %v666_v34  ;;  %v659_v43 = vmax.f32 %v1398_v32, %v635_v17  ;;  %v509_v5 = vadd.f32 %v1363_v56, %v1339_v26  ;;  %v566_v6 = vmax.f32 %v482_v24, 0.0 }
 0x100   : > { %v567_v35 = vmax.f32 %v485_v11, 0.0  ;;  %v583_v36 = vmax.f32 %v549_v51, 0.0  ;;  %v477_v37 = vadd.f32 %v476_v18, %v1339_v26  ;;  %v541_v38 = vadd.f32 %v540_v19, %v1339_v26 }
 0x101   : > { %v582_v45 = vmax.f32 %v546_v28, 0.0  ;;  %v474_v46 = vadd.f32 %v473_v54, %v1339_v26  ;;  %v538_v49 = vadd.f32 %v537_v57, %v1339_v26  ;;  %684 = vadd.xlane.f32.xlu1 %v1445_v39  ;;  %v1457_v52 = vmax.f32 %v656_v40, %v664_v42 }
 0x102   : > { %v667_v13 = vmax.f32 %v1401_v33, %v651_v22  ;;  %v595_v14 = vmul.f32 %v1347_v41, %v559_v12  ;;  %v657_v32 = vmax.f32 %v625_v9, %v633_v29  ;;  %v603_v55 = vmul.f32 %v1347_v41, %v567_v35 }
 0x103   : > { %v619_v58 = vmul.f32 %v1347_v41, %v583_v36  ;;  %v665_v56 = vmax.f32 %v641_v10, %v649_v30  ;;  %v565_v59 = vmax.f32 %v477_v37, 0.0  ;;  %v581_v60 = vmax.f32 %v541_v38, 0.0  ;;  %680 = vadd.xlane.f32.xlu0 %v1457_v52 }
 0x104   : > { %v1464_v54 = vmax.f32 %v659_v43, %v667_v13  ;;  %v611_v26 = vmul.f32 %v1347_v41, %v575_v20  ;;  %v557_v57 = vmax.f32 %v445_v44, 0.0  ;;  %v573_v61 = vmax.f32 %v509_v5, 0.0 }
 0x105   : > { %v602_v33 = vmul.f32 %v1347_v41, %v566_v6  ;;  %v618_v0 = vmul.f32 %v1347_v41, %v582_v45  ;;  %v564_v1 = vmax.f32 %v474_v46, 0.0  ;;  %v580_v2 = vmax.f32 %v538_v49, 0.0 }
 0x106   : > { %686 = vadd.xlane.f32.xlu1 %v1464_v54  ;;  %v706_v3 = vmul.f32 %v1445_v39, %v1445_v39  ;;  %v630_v4 = vadd.f32 %v1358_v53, %v1410_v47  ;;  %v631_v50 = vadd.f32 %v1358_v53, %v595_v14  ;;  %v639_v7 = vadd.f32 %v1358_v53, %v603_v55 }
 0x107   : > { %v655_v8 = vadd.f32 %v1358_v53, %v619_v58  ;;  %v601_v9 = vmul.f32 %v1347_v41, %v565_v59  ;;  %v617_v10 = vmul.f32 %v1347_v41, %v581_v60  ;;  %v707_v11 = vmul.f32 %v1464_v54, %v1464_v54 }
 0x108   : > { %716 = vadd.xlane.f32.xlu0 %v706_v3  ;;  %v1481_v51 = vmax.f32 %v657_v32, %v665_v56  ;;  %v647_v12 = vadd.f32 %v1358_v53, %v611_v26  ;;  %v593_v47 = vmul.f32 %v1347_v41, %v557_v57  ;;  %v609_v15 = vmul.f32 %v1347_v41, %v573_v61 }
 0x109   : > { %v638_v16 = vadd.f32 %v1358_v53, %v602_v33  ;;  %v654_v17 = vadd.f32 %v1358_v53, %v618_v0  ;;  %v600_v18 = vmul.f32 %v1347_v41, %v564_v1  ;;  %v616_v19 = vmul.f32 %v1347_v41, %v580_v2 }
 0x10a   : > { %718 = vadd.xlane.f32.xlu1 %v707_v11  ;;  %v704_v20 = vmul.f32 %v1457_v52, %v1457_v52  ;;  %v646_v22 = vadd.f32 %v1358_v53, %v1413_v48  ;;  %v592_v24 = vmul.f32 %v1347_v41, %v556_v62  ;;  %v608_v28 = vmul.f32 %v1347_v41, %v572_v63 }
 0x10b   : > { %v663_v29 = vmax.f32 %v631_v50, %v639_v7  ;;  %v637_v30 = vadd.f32 %v1358_v53, %v601_v9  ;;  %v653_v31 = vadd.f32 %v1358_v53, %v617_v10  ;;  %v705_v34 = vmul.f32 %v1481_v51, %v1481_v51 }
 0x10c   : > { %712 = vadd.xlane.f32.xlu0 %v704_v20  ;;  %v671_v35 = vmax.f32 %v647_v12, %v655_v8  ;;  %v629_v48 = vadd.f32 %v1358_v53, %v593_v47  ;;  %v645_v25 = vadd.f32 %v1358_v53, %v609_v15  ;;  %v636_v62 = vadd.f32 %v1358_v53, %v600_v18 }
 0x10d   : > { %v652_v27 = vadd.f32 %v1358_v53, %v616_v19  ;;  %v662_v41 = vmax.f32 %v630_v4, %v638_v16  ;;  %v670_v63 = vmax.f32 %v646_v22, %v654_v17  ;;  %v628_v36 = vadd.f32 %v1358_v53, %v592_v24 }
 0x10e   : > { %714 = vadd.xlane.f32.xlu1 %v705_v34  ;;  %v644_v37 = vadd.f32 %v1358_v53, %v608_v28  ;;  %v1511_v38 = vmax.f32 %v663_v29, %v671_v35  ;;  %v661_v40 = vmax.f32 %v629_v48, %v637_v30  ;;  %v669_v42 = vmax.f32 %v645_v25, %v653_v31 }
 0x10f   : > { %v1514_v43 = vmax.f32 %v662_v41, %v670_v63  ;;  %v660_v44 = vmax.f32 %v628_v36, %v636_v62  ;;  %v794_v31 = vsub.s32 3, %v1330_v21  ;;  %v806_v25 = vsub.s32 4, %v1330_v21 }
 0x110   : > { %682 = vadd.xlane.f32.xlu0 %v1481_v51  ;;  %v668_v5 = vmax.f32 %v644_v37, %v652_v27  ;;  %v1517_v6 = vmax.f32 %v661_v40, %v669_v42  ;;  %v711_v49 = vmul.f32 %v1511_v38, %v1511_v38 }
 0x111   : > { %v710_v13 = vmul.f32 %v1514_v43, %v1514_v43  ;;  %v1552_v63 = vrot.slane %v1336_v23, %v794_v31 }
 0x112   : > { %694 = vadd.xlane.f32.xlu1 %v1511_v38  ;;  %v1520_v45 = vmax.f32 %v660_v44, %v668_v5  ;;  %v709_v53 = vmul.f32 %v1517_v6, %v1517_v6 }
 0x114   : > { %692 = vadd.xlane.f32.xlu0 %v1514_v43  ;;  %v708_v46 = vmul.f32 %v1520_v45, %v1520_v45 }
 0x116   : > { %690 = vadd.xlane.f32.xlu1 %v1517_v6 }
 0x118   : > { %688 = vadd.xlane.f32.xlu0 %v1520_v45 }
 0x11a   : > { %722 = vadd.xlane.f32.xlu1 %v709_v53 }
 0x11c   : > { %720 = vadd.xlane.f32.xlu0 %v708_v46  ;;  %v1563_v46 = vrot.slane %v1336_v23, %v806_v25 }
 0x11e   : > { %726 = vadd.xlane.f32.xlu1 %v711_v49 }
 0x120   : > { %724 = vadd.xlane.f32.xlu0 %v710_v13 }
 0x18a   : > { %v685_v14 = vpop.xlane.xlu1 %684 }
 0x18b   : > { %v698_v55 = vmul.f32 0.03125, %v685_v14 }
 0x18c   : > { %v681_v32 = vpop.xlane.xlu0 %680 }
 0x18d   : > { %v738_v60 = vmul.f32 %v698_v55, %v698_v55  ;;  %v1533_v26 = vmul.f32 0.03125, %v681_v32  ;;  %v762_v40 = vsub.f32 %v1445_v39, %v698_v55 }
 0x18f   : > { %v687_v58 = vpop.xlane.xlu1 %686  ;;  %v736_v3 = vmul.f32 %v1533_v26, %v1533_v26 }
 0x190   : > { %v1531_v56 = vmul.f32 0.03125, %v687_v58 }
 0x191   : > { %v717_v59 = vpop.xlane.xlu0 %716 }
 0x192   : > { %v730_v57 = vmul.f32 0.03125, %v717_v59  ;;  %v739_v33 = vmul.f32 %v1531_v56, %v1531_v56  ;;  %v763_v53 = vsub.f32 %v1464_v54, %v1531_v56  ;;  %v760_v59 = vsub.f32 %v1457_v52, %v1533_v26 }
 0x193   : > { %v719_v61 = vpop.xlane.xlu1 %718 }
 0x194   : > { %v746_v0 = vsub.f32 %v730_v57, %v738_v60  ;;  %v731_v1 = vmul.f32 0.03125, %v719_v61 }
 0x195   : > { %v713_v2 = vpop.xlane.xlu0 %712 }
 0x196   : > { %v754_v4 = vmax.f32 %v746_v0, 0.0  ;;  %v747_v50 = vsub.f32 %v731_v1, %v739_v33  ;;  %v728_v7 = vmul.f32 0.03125, %v713_v2 }
 0x197   : > { %v715_v8 = vpop.xlane.xlu1 %714 }
 0x198   : > { %v770_v9 = vadd.f32 1e-05, %v754_v4  ;;  %v755_v10 = vmax.f32 %v747_v50, 0.0  ;;  %v744_v11 = vsub.f32 %v728_v7, %v736_v3  ;;  %v729_v19 = vmul.f32 0.03125, %v715_v8 }
 0x199   : > { %v683_v12 = vpop.xlane.xlu0 %682 }
 0x19a   : > { %1110 = vrsqrt.f32 %v770_v9  ;;  %v771_v47 = vadd.f32 1e-05, %v755_v10  ;;  %v752_v15 = vmax.f32 %v744_v11, 0.0  ;;  %v1539_v16 = vmul.f32 0.03125, %v683_v12 }
 0x19b   : > { %v695_v17 = vpop.xlane.xlu1 %694 }
 0x19c   : > { %1112 = vrsqrt.f32 %v771_v47  ;;  %v768_v18 = vadd.f32 1e-05, %v752_v15  ;;  %v737_v20 = vmul.f32 %v1539_v16, %v1539_v16  ;;  %v1555_v36 = vmul.f32 0.03125, %v695_v17 }
 0x19d   : > { %v693_v22 = vpop.xlane.xlu0 %692  ;;  %v761_v47 = vsub.f32 %v1481_v51, %v1539_v16 }
 0x19e   : > { %1114 = vrsqrt.f32 %v768_v18  ;;  %v745_v24 = vsub.f32 %v729_v19, %v737_v20  ;;  %v1565_v49 = vmul.f32 0.03125, %v693_v22  ;;  %v743_v60 = vmul.f32 %v1555_v36, %v1555_v36 }
 0x19f   : > { %v691_v28 = vpop.xlane.xlu1 %690  ;;  %v767_v31 = vsub.f32 %v1511_v38, %v1555_v36 }
 0x1a0   : > { %v753_v29 = vmax.f32 %v745_v24, 0.0  ;;  %v1543_v30 = vmul.f32 0.03125, %v691_v28  ;;  %v742_v0 = vmul.f32 %v1565_v49, %v1565_v49 }
 0x1a1   : > { %v689_v34 = vpop.xlane.xlu0 %688 }
 0x1a2   : > { %v769_v35 = vadd.f32 1e-05, %v753_v29  ;;  %v1546_v48 = vmul.f32 0.03125, %v689_v34  ;;  %v741_v27 = vmul.f32 %v1543_v30, %v1543_v30  ;;  %v765_v22 = vsub.f32 %v1517_v6, %v1543_v30 }
 0x1a3   : > { %v723_v62 = vpop.xlane.xlu1 %722  ;;  %v766_v6 = vsub.f32 %v1514_v43, %v1565_v49 }
 0x1a4   : > { %1116 = vrsqrt.f32 %v769_v35  ;;  %v733_v41 = vmul.f32 0.03125, %v723_v62  ;;  %v740_v42 = vmul.f32 %v1546_v48, %v1546_v48  ;;  %v764_v51 = vsub.f32 %v1520_v45, %v1546_v48 }
 0x1a5   : > { %v721_v37 = vpop.xlane.xlu0 %720 }
 0x1a6   : > { %v749_v21 = vsub.f32 %v733_v41, %v741_v27  ;;  %v732_v44 = vmul.f32 0.03125, %v721_v37 }
 0x1a7   : > { %v1111_v5 = vpop.eup %1110  ;;  %v727_v13 = vpop.xlane.xlu1 %726 }
 0x1a8   : > { %v786_v14 = vmul.f32 %v1111_v5, %v762_v40  ;;  %v757_v32 = vmax.f32 %v749_v21, 0.0  ;;  %v748_v39 = vsub.f32 %v732_v44, %v740_v42  ;;  %v735_v55 = vmul.f32 0.03125, %v727_v13 }
 0x1a9   : > { %v1113_v58 = vpop.eup %1112  ;;  %v725_v54 = vpop.xlane.xlu0 %724 }
 0x1aa   : > { %v798_v23 = vmul.f32 %v1552_v63, %v786_v14  ;;  %v787_v56 = vmul.f32 %v1113_v58, %v763_v53  ;;  %v773_v57 = vadd.f32 1e-05, %v757_v32  ;;  %v756_v61 = vmax.f32 %v748_v39, 0.0 }
 0x1ab   : > { %v1115_v33 = vpop.eup %1114  ;;  %v751_v1 = vsub.f32 %v735_v55, %v743_v60  ;;  %v734_v2 = vmul.f32 0.03125, %v725_v54 }
 0x1ac   : > { %v810_v3 = vadd.f32 %v1563_v46, %v798_v23  ;;  %v799_v4 = vmul.f32 %v1552_v63, %v787_v56  ;;  %v784_v52 = vmul.f32 %v1115_v33, %v760_v59  ;;  %1118 = vrsqrt.f32 %v773_v57 }
 0x1ad   : > { %v772_v26 = vadd.f32 1e-05, %v756_v61  ;;  %v759_v50 = vmax.f32 %v751_v1, 0.0  ;;  %v750_v7 = vsub.f32 %v734_v2, %v742_v0 }
 0x1ae   : > { %818 = vst [vmem:[%s1578_s21 + $0x10] sm:$0xff] %v810_v3  ;;  %v811_v8 = vadd.f32 %v1563_v46, %v799_v4  ;;  %v796_v9 = vmul.f32 %v1552_v63, %v784_v52 }
 0x1af   : > { %1120 = vrsqrt.f32 %v772_v26  ;;  %v775_v10 = vadd.f32 1e-05, %v759_v50  ;;  %v758_v11 = vmax.f32 %v750_v7, 0.0 }
 0x1b0   : > { %819 = vst [vmem:[%s1578_s21 + $0x18] sm:$0xff] %v811_v8  ;;  %v808_v12 = vadd.f32 %v1563_v46, %v796_v9 }
 0x1b1   : > { %v1117_v15 = vpop.eup %1116  ;;  %1122 = vrsqrt.f32 %v775_v10  ;;  %v774_v17 = vadd.f32 1e-05, %v758_v11 }
 0x1b2   : > { %816 = vst [vmem:[%s1578_s21] sm:$0xff] %v808_v12  ;;  %v785_v18 = vmul.f32 %v1117_v15, %v761_v47 }
 0x1b3   : > { %1124 = vrsqrt.f32 %v774_v17 }
 0x1b4   : > { %v797_v19 = vmul.f32 %v1552_v63, %v785_v18 }
 0x1b6   : > { %v809_v20 = vadd.f32 %v1563_v46, %v797_v19 }
 0x1b8   : > { %817 = vst [vmem:[%s1578_s21 + $0x8] sm:$0xff] %v809_v20 }
 0x1b9   : > { %v1119_v24 = vpop.eup %1118 }
 0x1ba   : > { %v789_v28 = vmul.f32 %v1119_v24, %v765_v22 }
 0x1bc   : > { %v1121_v16 = vpop.eup %1120  ;;  %v801_v29 = vmul.f32 %v1552_v63, %v789_v28 }
 0x1bd   : > { %v788_v34 = vmul.f32 %v1121_v16, %v764_v51 }
 0x1be   : > { %v1123_v35 = vpop.eup %1122  ;;  %v813_v25 = vadd.f32 %v1563_v46, %v801_v29 }
 0x1bf   : > { %v800_v30 = vmul.f32 %v1552_v63, %v788_v34  ;;  %v791_v45 = vmul.f32 %v1123_v35, %v767_v31 }
 0x1c0   : > { %v1125_v48 = vpop.eup %1124  ;;  %821 = vst [vmem:[%s1578_s21 + $0x28] sm:$0xff] %v813_v25 }
 0x1c1   : > { %v812_v62 = vadd.f32 %v1563_v46, %v800_v30  ;;  %v803_v38 = vmul.f32 %v1552_v63, %v791_v45  ;;  %v790_v27 = vmul.f32 %v1125_v48, %v766_v6 }
 0x1c3   : > { %820 = vst [vmem:[%s1578_s21 + $0x20] sm:$0xff] %v812_v62  ;;  %v815_v41 = vadd.f32 %v1563_v46, %v803_v38  ;;  %v802_v43 = vmul.f32 %v1552_v63, %v790_v27 }
 0x1c5   : > { %823 = vst [vmem:[%s1578_s21 + $0x38] sm:$0xff] %v815_v41  ;;  %v814_v36 = vadd.f32 %v1563_v46, %v802_v43 }
 0x1c7   : > { %822 = vst [vmem:[%s1578_s21 + $0x30] sm:$0xff] %v814_v36 }
 0x1c8   : > { %1139 = shalt.err (!%p1136_p5)
}
 0x1c9   : > { %s1140_s7 = scalar_lea.hbm %s1613_s29, 1024  ;;  %s1144_s10 = scalar_lea.hbm %s1670_s3, 2048 }
 0x1ca   : > { %p1141_p6 = scmp.ne.s32.totalorder %s1613_s29, %s1140_s7  ;;  %p1145_p10 = scmp.lt.s32.totalorder %s1613_s29, %s1670_s3 }
 0x1cb   : > { %p1146_p11 = scmp.lt.s32.totalorder %s1144_s10, %s1140_s7 }
 0x1cc   : > { %p1142_p7 = pnand %p1141_p6, %p1267_p4 }
 0x1cd   : > { %p1147_p12 = por %p1146_p11, %p1145_p10 }
 0x1ce   : > { %p1143_p9 = pneg %p1142_p7 }
 0x1d0   : > { %p1148_p13 = pnand %p1147_p12, %p1143_p9 }
 0x1d2   : > { %1151 = shalt.err (!%p1148_p13)
}
 0x1d3   : > { %s1205_s19 = smov 128   ;;  %s1206_s21 = smov 8  }
 0x1d4   : > { %1034 = dma.vmem_to_hbm [thread:$0]  (%p1267_p4), %s1615_s26, 1024, %s1613_s29, %s1622_s15, %s1205_s19, %s1205_s19, %s1206_s21  }
 0x1d5 PF: > { %p1040_p0 = scmp.ge.s32.totalorder %s1202_s17, 2  ;;  %s855_s23 = sand.u32 1, %s1182_s12  }
 0x1d6   : > { %s856_s27 = scalar_lea.sflag [#allocation3], %s855_s23 }
 0x1d7   : > { %p1037_p1 = pnand %p1040_p0, %p1274_p8 }
 0x1d9   : > { %p1038_p2 = pneg %p1037_p1 }
 0x1db   : > { %1177 = dma.done.wait (%p1038_p2), %s856_s27, 1024  }
 0x1dc   : > { %1179 = vsyncadd (%p1038_p2), %s856_s27, 4294966272  ;;  %s16_s17 = sadd.s32 1, %s1202_s17   ;;  %s1673_s12 = smov %s1186_s13 }
 0x1dd   : > { %p13_p3 = scmp.ge.s32.totalorder %s16_s17, 4   ;;  %s1674_s13 = smov %s1190_s14 }
 0x1de   : > { %s1675_s14 = smov %s1280_s25  ;;  %s1676_s15 = smov %s1198_s16 }
 0x1df   : > { %s1677_s16 = smov %s1679_s20  ;;  %15 = sbr.rel (!%p13_p3) target bundleno = 4 (0x4), region = 67 }
 0x1e4   :  { %861 = vsyncpa [#allocation3], 1 }
 0x1e5   :  { %863 = vsyncpa [#allocation3 + $0x1], 1 }

</bundles_post_ra>
